<compile_context>
chip_gen: v5e
topology: v5e:2x2
jax: 0.10.0
libtpu: 0.0.40
codegen_flags: <defaults>
</compile_context>

<pallas_src>
import functools

import jax
import jax.numpy as jnp
from jax.experimental import pallas as pl
from jax.experimental.pallas import tpu as pltpu


def _round_up(x, m):
    return ((x + m - 1) // m) * m


def smallmlp_kernel(x_ref, w1_ref, b1_ref, w2_ref, b2_ref,
                    w3_ref, b3_ref, w4_ref, b4_ref, o_ref):
    """One batch tile of the SmallMLP forward pass.

    x_ref / weights are bf16 (MXU operands); biases, accumulation, ReLU and
    the output are f32.
    """
    cd = x_ref.dtype  # compute (matmul operand) dtype, e.g. bfloat16

    x = x_ref[...]                                   # (TB, F) bf16

    # fc1 + relu
    h1 = jnp.dot(x, w1_ref[...], preferred_element_type=jnp.float32) + b1_ref[...]
    h1 = jnp.maximum(h1, 0.0)

    # fc2 (no relu yet — probes see pre-ReLU h2; they are skipped entirely)
    h2 = jnp.dot(h1.astype(cd), w2_ref[...],
                 preferred_element_type=jnp.float32) + b2_ref[...]

    # relu, then fc3 + relu
    h2r = jnp.maximum(h2, 0.0)
    h3 = jnp.dot(h2r.astype(cd), w3_ref[...],
                 preferred_element_type=jnp.float32) + b3_ref[...]
    h3 = jnp.maximum(h3, 0.0)

    # fc4 (output columns are padded to a full 128-lane slab; pad cols are 0)
    y = jnp.dot(h3.astype(cd), w4_ref[...],
                preferred_element_type=jnp.float32) + b4_ref[...]
    o_ref[...] = y.astype(o_ref.dtype)


@functools.partial(jax.jit, static_argnames=("block_b",))
def smallmlp_forward(x, params, *, block_b=512):
    """x: (B, F) float32.  params: dict of (in,out) f32 weights, (1,out) f32 biases."""
    B, F = x.shape
    out_dim = params["w4"].shape[1]
    out_pad = _round_up(max(out_dim, 128), 128)      # lane-dense output slab
    compute_dtype = jnp.bfloat16                      # MXU operand dtype

    # Batch tile: big enough to pipeline, clamped (and 8-aligned) for tiny B.
    tb = min(block_b, _round_up(B, 8))
    b_pad = _round_up(B, tb)
    if b_pad != B:
        x = jnp.pad(x, ((0, b_pad - B), (0, 0)))

    # Cast matmul operands to bf16; keep biases f32. Pad fc4 to 128 lanes.
    xq = x.astype(compute_dtype)
    w1 = params["w1"].astype(compute_dtype)
    w2 = params["w2"].astype(compute_dtype)
    w3 = params["w3"].astype(compute_dtype)
    w4 = jnp.pad(params["w4"], ((0, 0), (0, out_pad - out_dim))).astype(compute_dtype)
    b1, b2, b3 = params["b1"], params["b2"], params["b3"]
    b4 = jnp.pad(params["b4"], ((0, 0), (0, out_pad - out_dim)))

    args = (xq, w1, b1, w2, b2, w3, b3, w4, b4)

    # Weights/biases: full-extent blocks with constant index_map -> resident,
    # DMA'd once (no per-step re-fetch).
    def full_spec(a):
        return pl.BlockSpec(a.shape, lambda i: (0,) * a.ndim)

    in_specs = [pl.BlockSpec((tb, F), lambda i: (i, 0))] + \
               [full_spec(a) for a in args[1:]]

    # Advisory cost hint for XLA scheduling around the custom call.
    d1, d2, d3 = params["w1"].shape[1], params["w2"].shape[1], params["w3"].shape[1]
    flops = 2 * b_pad * (F * d1 + d1 * d2 + d2 * d3 + d3 * out_pad)
    bytes_accessed = sum(int(a.size) * a.dtype.itemsize for a in args) \
        + b_pad * out_pad * 4
    cost = pl.CostEstimate(flops=flops, transcendentals=0,
                           bytes_accessed=bytes_accessed)

    out = pl.pallas_call(
        smallmlp_kernel,
        out_shape=jax.ShapeDtypeStruct((b_pad, out_pad), jnp.float32),
        grid=(b_pad // tb,),
        in_specs=in_specs,
        out_specs=pl.BlockSpec((tb, out_pad), lambda i: (i, 0)),
        compiler_params=pltpu.CompilerParams(
            dimension_semantics=("parallel",)),
        cost_estimate=cost,
    )(*args)

    return out[:B, :out_dim]


def init_linear(key, fan_in, fan_out):
    """Deterministic init mimicking torch.nn.Linear default (uniform +/- 1/sqrt(fan_in))."""
    kw, kb = jax.random.split(key)
    bound = 1.0 / jnp.sqrt(jnp.float32(fan_in))
    # stored pre-transposed: (in, out)
    w = jax.random.uniform(kw, (fan_in, fan_out), jnp.float32, -bound, bound)
    b = jax.random.uniform(kb, (1, fan_out), jnp.float32, -bound, bound)
    return w, b


def reference_forward(x, params, compute_dtype=jnp.bfloat16):
    """Pure-JAX reference with the same bf16-operand / f32-accumulate recipe."""
    cd = compute_dtype
    h1 = jnp.dot(x.astype(cd), params["w1"].astype(cd),
                 preferred_element_type=jnp.float32) + params["b1"]
    h1 = jnp.maximum(h1, 0.0)
    h2 = jnp.dot(h1.astype(cd), params["w2"].astype(cd),
                 preferred_element_type=jnp.float32) + params["b2"]
    h2r = jnp.maximum(h2, 0.0)
    h3 = jnp.dot(h2r.astype(cd), params["w3"].astype(cd),
                 preferred_element_type=jnp.float32) + params["b3"]
    h3 = jnp.maximum(h3, 0.0)
    return jnp.dot(h3.astype(cd), params["w4"].astype(cd),
                   preferred_element_type=jnp.float32) + params["b4"]


if __name__ == "__main__":
    key = jax.random.PRNGKey(0)
    k_x, k_x2, k1, k2, k3, k4 = jax.random.split(key, 6)

    # Small shapes consistent with SmallMLP(input_size, output_size):
    # input arrives as a (B, 1, 8, 8) "image" and is flattened in forward.
    batch, input_size, output_size = 8, 64, 10

    x_img = jax.random.normal(k_x, (batch, 1, 8, 8), jnp.float32)
    x = x_img.reshape(batch, -1)            # == x.view(x.shape[0], -1)

    params = {}
    params["w1"], params["b1"] = init_linear(k1, input_size, 50)   # fc1: F  -> 50
    params["w2"], params["b2"] = init_linear(k2, 50, 20)           # fc2: 50 -> 20
    params["w3"], params["b3"] = init_linear(k3, 20, 20)           # fc3: 20 -> 20
    params["w4"], params["b4"] = init_linear(k4, 20, output_size)  # fc4: 20 -> out

    # Small-batch run (single grid step, exercises clamped tile size).
    out = jax.block_until_ready(smallmlp_forward(x, params))
    ref = reference_forward(x, params)
    assert out.shape == (batch, output_size)
    assert jnp.allclose(out, ref, atol=1e-3, rtol=1e-3)

    # Larger, non-tile-multiple batch (exercises batch grid + padding path).
    big_batch = 1040
    x_big = jax.random.normal(k_x2, (big_batch, input_size), jnp.float32)
    out_big = jax.block_until_ready(smallmlp_forward(x_big, params))
    ref_big = reference_forward(x_big, params)
    assert out_big.shape == (big_batch, output_size)
    assert jnp.allclose(out_big, ref_big, atol=1e-3, rtol=1e-3)

    print("KERNEL_OK")
</pallas_src>

<mosaic_0001>
module attributes {stable_mosaic.version = 11 : i64} {
  func.func @smallmlp_kernel(%arg0: i32, %arg1: memref<8x64xbf16, #tpu.memory_space<vmem>>, %arg2: memref<64x50xbf16, #tpu.memory_space<vmem>>, %arg3: memref<1x50xf32, #tpu.memory_space<vmem>>, %arg4: memref<50x20xbf16, #tpu.memory_space<vmem>>, %arg5: memref<1x20xf32, #tpu.memory_space<vmem>>, %arg6: memref<20x20xbf16, #tpu.memory_space<vmem>>, %arg7: memref<1x20xf32, #tpu.memory_space<vmem>>, %arg8: memref<20x128xbf16, #tpu.memory_space<vmem>>, %arg9: memref<1x128xf32, #tpu.memory_space<vmem>>, %arg10: memref<8x128xf32, #tpu.memory_space<vmem>>) attributes {dimension_semantics = [#tpu.dimension_semantics<parallel>], iteration_bounds = array<i64: 1>, scalar_prefetch = 0 : i64, scratch_operands = 0 : i64, tpu.core_type = #tpu.core_type<tc>, window_params = [{transform_indices = @transform_0, window_bounds = array<i64: 8, 64>}, {pipeline_mode = #tpu.pipeline_mode<synchronous>, transform_indices = @transform_1, window_bounds = array<i64: 64, 50>}, {pipeline_mode = #tpu.pipeline_mode<synchronous>, transform_indices = @transform_2, window_bounds = array<i64: 1, 50>}, {pipeline_mode = #tpu.pipeline_mode<synchronous>, transform_indices = @transform_3, window_bounds = array<i64: 50, 20>}, {pipeline_mode = #tpu.pipeline_mode<synchronous>, transform_indices = @transform_4, window_bounds = array<i64: 1, 20>}, {pipeline_mode = #tpu.pipeline_mode<synchronous>, transform_indices = @transform_5, window_bounds = array<i64: 20, 20>}, {pipeline_mode = #tpu.pipeline_mode<synchronous>, transform_indices = @transform_6, window_bounds = array<i64: 1, 20>}, {pipeline_mode = #tpu.pipeline_mode<synchronous>, transform_indices = @transform_7, window_bounds = array<i64: 20, 128>}, {pipeline_mode = #tpu.pipeline_mode<synchronous>, transform_indices = @transform_8, window_bounds = array<i64: 1, 128>}, {transform_indices = @transform_9, window_bounds = array<i64: 8, 128>}]} {
    %c0 = arith.constant 0 : index
    %c0_0 = arith.constant 0 : index
    %0 = vector.load %arg1[%c0, %c0_0] : memref<8x64xbf16, #tpu.memory_space<vmem>>, vector<8x64xbf16>
    %c0_1 = arith.constant 0 : index
    %c0_2 = arith.constant 0 : index
    %1 = vector.load %arg2[%c0_1, %c0_2] : memref<64x50xbf16, #tpu.memory_space<vmem>>, vector<64x50xbf16>
    %cst = arith.constant dense<0.000000e+00> : vector<8x50xf32>
    %2 = tpu.matmul %0, %1, %cst {dimension_numbers = #tpu.dot_dimension_numbers<[1], [0], [0], [1], [0, 0, 1, 1], [], []>} : vector<8x64xbf16>, vector<64x50xbf16>, vector<8x50xf32> -> vector<8x50xf32>
    %c0_3 = arith.constant 0 : index
    %c0_4 = arith.constant 0 : index
    %3 = vector.load %arg3[%c0_3, %c0_4] : memref<1x50xf32, #tpu.memory_space<vmem>>, vector<1x50xf32>
    %4 = vector.broadcast %3 : vector<1x50xf32> to vector<8x50xf32>
    %5 = arith.addf %2, %4 : vector<8x50xf32>
    %cst_5 = arith.constant 0.000000e+00 : f32
    %6 = vector.broadcast %cst_5 : f32 to vector<8x50xf32>
    %7 = arith.maximumf %5, %6 : vector<8x50xf32>
    %8 = arith.truncf %7 : vector<8x50xf32> to vector<8x50xbf16>
    %c0_6 = arith.constant 0 : index
    %c0_7 = arith.constant 0 : index
    %9 = vector.load %arg4[%c0_6, %c0_7] : memref<50x20xbf16, #tpu.memory_space<vmem>>, vector<50x20xbf16>
    %cst_8 = arith.constant dense<0.000000e+00> : vector<8x20xf32>
    %10 = tpu.matmul %8, %9, %cst_8 {dimension_numbers = #tpu.dot_dimension_numbers<[1], [0], [0], [1], [0, 0, 1, 1], [], []>} : vector<8x50xbf16>, vector<50x20xbf16>, vector<8x20xf32> -> vector<8x20xf32>
    %c0_9 = arith.constant 0 : index
    %c0_10 = arith.constant 0 : index
    %11 = vector.load %arg5[%c0_9, %c0_10] : memref<1x20xf32, #tpu.memory_space<vmem>>, vector<1x20xf32>
    %12 = vector.broadcast %11 : vector<1x20xf32> to vector<8x20xf32>
    %13 = arith.addf %10, %12 : vector<8x20xf32>
    %cst_11 = arith.constant 0.000000e+00 : f32
    %14 = vector.broadcast %cst_11 : f32 to vector<8x20xf32>
    %15 = arith.maximumf %13, %14 : vector<8x20xf32>
    %16 = arith.truncf %15 : vector<8x20xf32> to vector<8x20xbf16>
    %c0_12 = arith.constant 0 : index
    %c0_13 = arith.constant 0 : index
    %17 = vector.load %arg6[%c0_12, %c0_13] : memref<20x20xbf16, #tpu.memory_space<vmem>>, vector<20x20xbf16>
    %cst_14 = arith.constant dense<0.000000e+00> : vector<8x20xf32>
    %18 = tpu.matmul %16, %17, %cst_14 {dimension_numbers = #tpu.dot_dimension_numbers<[1], [0], [0], [1], [0, 0, 1, 1], [], []>} : vector<8x20xbf16>, vector<20x20xbf16>, vector<8x20xf32> -> vector<8x20xf32>
    %c0_15 = arith.constant 0 : index
    %c0_16 = arith.constant 0 : index
    %19 = vector.load %arg7[%c0_15, %c0_16] : memref<1x20xf32, #tpu.memory_space<vmem>>, vector<1x20xf32>
    %20 = vector.broadcast %19 : vector<1x20xf32> to vector<8x20xf32>
    %21 = arith.addf %18, %20 : vector<8x20xf32>
    %cst_17 = arith.constant 0.000000e+00 : f32
    %22 = vector.broadcast %cst_17 : f32 to vector<8x20xf32>
    %23 = arith.maximumf %21, %22 : vector<8x20xf32>
    %24 = arith.truncf %23 : vector<8x20xf32> to vector<8x20xbf16>
    %c0_18 = arith.constant 0 : index
    %c0_19 = arith.constant 0 : index
    %25 = vector.load %arg8[%c0_18, %c0_19] : memref<20x128xbf16, #tpu.memory_space<vmem>>, vector<20x128xbf16>
    %cst_20 = arith.constant dense<0.000000e+00> : vector<8x128xf32>
    %26 = tpu.matmul %24, %25, %cst_20 {dimension_numbers = #tpu.dot_dimension_numbers<[1], [0], [0], [1], [0, 0, 1, 1], [], []>} : vector<8x20xbf16>, vector<20x128xbf16>, vector<8x128xf32> -> vector<8x128xf32>
    %c0_21 = arith.constant 0 : index
    %c0_22 = arith.constant 0 : index
    %27 = vector.load %arg9[%c0_21, %c0_22] : memref<1x128xf32, #tpu.memory_space<vmem>>, vector<1x128xf32>
    %28 = vector.broadcast %27 : vector<1x128xf32> to vector<8x128xf32>
    %29 = arith.addf %26, %28 : vector<8x128xf32>
    %c0_23 = arith.constant 0 : index
    %c0_24 = arith.constant 0 : index
    %30 = vector.load %arg10[%c0_23, %c0_24] : memref<8x128xf32, #tpu.memory_space<vmem>>, vector<8x128xf32>
    tpu.vector_store %arg10[%c0_23, %c0_24], %29 {strides = array<i32>} : memref<8x128xf32, #tpu.memory_space<vmem>>, vector<8x128xf32>,
    return
  }
  func.func @transform_0(%arg0: i32) -> (i32, i32) {
    %c0_i32 = arith.constant 0 : i32
    %c0_i32_0 = arith.constant 0 : i32
    return %arg0, %c0_i32 : i32, i32
  }
  func.func @transform_1(%arg0: i32) -> (i32, i32) {
    %c0_i32 = arith.constant 0 : i32
    %c0_i32_0 = arith.constant 0 : i32
    %c0_i32_1 = arith.constant 0 : i32
    return %c0_i32, %c0_i32_0 : i32, i32
  }
  func.func @transform_2(%arg0: i32) -> (i32, i32) {
    %c0_i32 = arith.constant 0 : i32
    %c0_i32_0 = arith.constant 0 : i32
    %c0_i32_1 = arith.constant 0 : i32
    return %c0_i32, %c0_i32_0 : i32, i32
  }
  func.func @transform_3(%arg0: i32) -> (i32, i32) {
    %c0_i32 = arith.constant 0 : i32
    %c0_i32_0 = arith.constant 0 : i32
    %c0_i32_1 = arith.constant 0 : i32
    return %c0_i32, %c0_i32_0 : i32, i32
  }
  func.func @transform_4(%arg0: i32) -> (i32, i32) {
    %c0_i32 = arith.constant 0 : i32
    %c0_i32_0 = arith.constant 0 : i32
    %c0_i32_1 = arith.constant 0 : i32
    return %c0_i32, %c0_i32_0 : i32, i32
  }
  func.func @transform_5(%arg0: i32) -> (i32, i32) {
    %c0_i32 = arith.constant 0 : i32
    %c0_i32_0 = arith.constant 0 : i32
    %c0_i32_1 = arith.constant 0 : i32
    return %c0_i32, %c0_i32_0 : i32, i32
  }
  func.func @transform_6(%arg0: i32) -> (i32, i32) {
    %c0_i32 = arith.constant 0 : i32
    %c0_i32_0 = arith.constant 0 : i32
    %c0_i32_1 = arith.constant 0 : i32
    return %c0_i32, %c0_i32_0 : i32, i32
  }
  func.func @transform_7(%arg0: i32) -> (i32, i32) {
    %c0_i32 = arith.constant 0 : i32
    %c0_i32_0 = arith.constant 0 : i32
    %c0_i32_1 = arith.constant 0 : i32
    return %c0_i32, %c0_i32_0 : i32, i32
  }
  func.func @transform_8(%arg0: i32) -> (i32, i32) {
    %c0_i32 = arith.constant 0 : i32
    %c0_i32_0 = arith.constant 0 : i32
    %c0_i32_1 = arith.constant 0 : i32
    return %c0_i32, %c0_i32_0 : i32, i32
  }
  func.func @transform_9(%arg0: i32) -> (i32, i32) {
    %c0_i32 = arith.constant 0 : i32
    %c0_i32_0 = arith.constant 0 : i32
    return %arg0, %c0_i32 : i32, i32
  }
}

</mosaic_0001>

<bundles_post_ra>
// kernel: smallmlp_forward.1
= control target key start
LH: loop header
LB: loop body
LE: loop exit
PB: predicated region body
PF: predicated region fallthrough
CT: control target
= control target key end

     0   :  { %vm126_vm0 = vcmask 1040384   ;;  %s425_s0 = inlined_call_operand.vmem [shape: bf16[8,64], index: 0, kind: input, shape index: {}]   ;;  %s426_s1 = inlined_call_operand.vmem [shape: bf16[64,50], index: 1, kind: input, shape index: {}]   ;;  %s427_s2 = inlined_call_operand.vmem [shape: f32[1,50], index: 2, kind: input, shape index: {}]   ;;  %s428_s3 = inlined_call_operand.vmem [shape: bf16[50,20], index: 3, kind: input, shape index: {}]   ;;  %s429_s4 = inlined_call_operand.vmem [shape: f32[1,20], index: 4, kind: input, shape index: {}]   ;;  %s430_s5 = inlined_call_operand.vmem [shape: bf16[20,20], index: 5, kind: input, shape index: {}]   ;;  %s431_s6 = inlined_call_operand.vmem [shape: f32[1,20], index: 6, kind: input, shape index: {}]   ;;  %s432_s7 = inlined_call_operand.vmem [shape: bf16[20,128], index: 7, kind: input, shape index: {}]   ;;  %s433_s8 = inlined_call_operand.vmem [shape: f32[1,128], index: 8, kind: input, shape index: {}]   ;;  %s434_s9 = inlined_call_operand.hbm [shape: f32[8,128], index: 9, kind: output, shape index: {}]  }
   0x1   :  { %v279_v0 = vld [vmem:[%s426_s1 + $0x18] sm:$0xff]  ;;  %v278_v2 = vld [vmem:[%s426_s1 + $0x10] sm:$0xff] }
   0x2   :  { %v96_v1 = vld [vmem:[%s428_s3 + $0x18] sm:$0x1]  ;;  %79 = vmatpush.bf16.msra.mxu0 %v279_v0 }
   0x3   :  { %v114_v3 = vunpack.c.l.b16 %v96_v1 }
   0x5   :  { %v118_v4 = vpack.c.b16 %v114_v3, %v114_v3 }
   0x6   :  { %14 = vsyncpa [#allocation3], 0  ;;  %80 = vmatpush.bf16.msra.mxu0 %v278_v2  ;;  %v277_v5 = vld [vmem:[%s426_s1 + $0x8] sm:$0xff]  ;;  %v282_v7 = vld [vmem:[%s428_s3 + $0x10] sm:$0xff]  ;;  %vm71_vm1 = vcmask 523264   ;;  %vm122_vm2 = vcmask 408576  }
   0x7   :  { %v128_v6 = vsel %vm126_vm0, %v118_v4, 0  ;;  %v276_v8 = vld [vmem:[%s426_s1] sm:$0xff]  ;;  %v281_v10 = vld [vmem:[%s428_s3 + $0x8] sm:$0xff]  ;;  %vm165_vm3 = vcmask 1041408   ;;  %vm161_vm4 = vcmask 162816   ;;  %s316_s16 = smov [#allocation2]  }
   0x8   :  { %134 = vmatpush.bf16.msra.mxu1 %v128_v6  ;;  %v34_v9 = vld [vmem:[%s425_s0] sm:$0xf]  ;;  %v147_v18 = vld [vmem:[%s430_s5 + $0x8] sm:$0x3]  ;;  %s225_s17 = sshll.u32 %s316_s16, 4  ;;  %s227_s19 = sshll.u32 %s434_s9, 4  ;;  %s226_s17 = int_to_ptr.vmem [resolvable:$true] %s225_s17  ;;  %s228_s19 = int_to_ptr.hbm [resolvable:$true] %s227_s19 }
   0x9   :  { %v280_v11 = vld [vmem:[%s428_s3] sm:$0xff]  ;;  %v157_v19 = vunpack.c.l.b16 %v147_v18  ;;  %v186_v29 = vld [vmem:[%s432_s7 + $0x8] sm:$0x3] }
   0xa   :  { %81 = vmatpush.bf16.msra.mxu0 %v277_v5  ;;  %v286_v12 = vld [vmem:[%s427_s2] ss:$0 sm:$0xff]  ;;  %v196_v30 = vunpack.c.l.b16 %v186_v29 }
   0xb   :  { %v159_v20 = vpack.c.b16 %v157_v19, %v157_v19  ;;  %v283_v22 = vld [vmem:[%s430_s5] sm:$0xff] }
   0xc   :  { %135 = vmatpush.bf16.msra.mxu1 %v282_v7  ;;  %v287_v23 = vld [vmem:[%s429_s4] ss:$0 sm:$0xff]  ;;  %v198_v31 = vpack.c.b16 %v196_v30, %v196_v30 }
   0xd   :  { %v167_v21 = vsel %vm165_vm3, %v159_v20, 0  ;;  %v284_v33 = vld [vmem:[%s432_s7] sm:$0xff] }
   0xe   :  { %82 = vmatpush.bf16.msra.mxu0 %v276_v8  ;;  %175 = vmatpush.bf16.msra.mxu2 %v167_v21  ;;  %v204_v32 = vsel %vm165_vm3, %v198_v31, 0  ;;  %v288_v34 = vld [vmem:[%s431_s6] ss:$0 sm:$0xff] }
   0xf   :  { %212 = vmatpush.bf16.msra.mxu3 %v204_v32  ;;  %v289_v40 = vld [vmem:[%s433_s8] ss:$0 sm:$0xff] }
  0x10   :  { %136 = vmatpush.bf16.msra.mxu1 %v281_v10 }
  0x11   :  { %252 = vmatmul.msk.bf16.vlgmr.msra.gmra.mxu0 %vm71_vm1, %v34_v9 }
  0x12   :  { %176 = vmatpush.bf16.msra.mxu2 %v283_v22 }
  0x13   :  { %213 = vmatpush.bf16.msra.mxu3 %v284_v33 }
  0x14   :  { %137 = vmatpush.bf16.msra.mxu1 %v280_v11 }
  0x8e   :  { %v84_v13 = vpop.f32.mrf.mxu0 }
  0x8f   :  { %v85_v14 = vadd.f32 %v286_v12, %v84_v13 }
  0x91   :  { %v88_v15 = vmax.f32 %v85_v14, 0.0 }
  0x93   :  { %v89_v16 = vpack.c.bf16 %v88_v15, %v88_v15 }
  0x95   :  { %265 = vmatmul.msk.bf16.vlgmr.msra.gmra.mxu1 %vm122_vm2, %v89_v16 }
  0x96   :  { %v86_v17 = vpop.f32.mrf.mxu0 }
 0x112   :  { %v139_v24 = vpop.f32.mrf.mxu1 }
 0x113   :  { %v140_v25 = vadd.f32 %v287_v23, %v139_v24 }
 0x115   :  { %v143_v26 = vmax.f32 %v140_v25, 0.0 }
 0x117   :  { %v144_v27 = vpack.c.bf16 %v143_v26, %v143_v26 }
 0x119   :  { %270 = vmatmul.msk.bf16.vlgmr.msra.gmra.mxu2 %vm161_vm4, %v144_v27 }
 0x11a   :  { %v141_v28 = vpop.f32.mrf.mxu1 }
 0x19c   :  { %v178_v35 = vpop.f32.mrf.mxu2 }
 0x19d   :  { %v179_v36 = vadd.f32 %v288_v34, %v178_v35 }
 0x19f   :  { %v182_v37 = vmax.f32 %v179_v36, 0.0 }
 0x1a1   :  { %v183_v38 = vpack.c.bf16 %v182_v37, %v182_v37 }
 0x1a3   :  { %275 = vmatmul.msk.bf16.vlgmr.msra.gmra.mxu3 %vm161_vm4, %v183_v38 }
 0x1a4   :  { %v180_v39 = vpop.f32.mrf.mxu2 }
 0x226   :  { %v215_v41 = vpop.f32.mrf.mxu3 }
 0x227   :  { %v216_v42 = vadd.f32 %v289_v40, %v215_v41 }
 0x229   :  { %219 = vst [vmem:[#allocation2] sm:$0xff] %v216_v42 }
 0x22a   :  { %230 = dma.vmem_to_hbm [thread:$0]  %s226_s17, 128, %s228_s19, [#allocation3]  }
 0x22e   :  { %v217_v43 = vpop.f32.mrf.mxu3 }
 0x22f   :  { %314 = dma.done.wait [#allocation3], 128  }
 0x230   :  { %315 = vsyncadd [#allocation3], 4294967168 }
 0x231   :  { %235 = vsyncpa [#allocation3], 1 }

</bundles_post_ra>
